<compile_context>
chip_gen: v7x
topology: tpu7x:2x2x1
jax: 0.10.0
libtpu: 0.0.40
codegen_flags: <defaults>
</compile_context>

<pallas_src>
import math

import numpy as np
import jax
import jax.numpy as jnp
from jax.experimental import pallas as pl
from jax.experimental.pallas import tpu as pltpu


def _device_budgets():
    """(per-tile byte target, vmem_limit_bytes), conservative unless v5/v6 detected."""
    kind = ""
    try:
        kind = jax.devices()[0].device_kind.lower()
    except Exception:
        pass
    if any(tag in kind for tag in ("v5", "v6")):
        # 128 MiB physical VMEM: bigger tiles, higher scoped limit.
        return 12 * 1024 * 1024, 64 * 1024 * 1024
    # v7x (64 MiB physical VMEM) / unknown: 4 x 8 MiB buffering fits comfortably.
    return 8 * 1024 * 1024, 48 * 1024 * 1024


def _choose_tiles(B, F, itemsize, target_bytes):
    """Pick (TB, TD) for the flattened (B, F) view.  Used with a cdiv grid, so
    neither tile has to divide the array extent exactly (Pallas masks the tail)."""
    # Packed-sublane row multiple: 8 (f32), 16 (bf16/f16), 32 (int8/fp8).
    sub = 8 * max(1, 4 // max(1, itemsize))
    target_elems = max(sub * 128, target_bytes // max(1, itemsize))
    rows_min = sub if B >= sub else max(1, B)

    # Lane (last-dim) tile: multiple of 128 when possible, else full extent.
    if F < 128:
        td = F
    else:
        max_lanes = max(128, ((target_elems // rows_min) // 128) * 128)
        td = min((F // 128) * 128, max_lanes, 32768)

    # Row (second-to-last) tile: multiple of `sub`, grown to fill the byte budget.
    if B < sub:
        tb = B
    else:
        max_rows = max(sub, ((target_elems // max(1, td)) // sub) * sub)
        tb = min((B // sub) * sub, max_rows)
    return tb, td


def drop_path(x, drop_prob: float = 0.0, training: bool = False, *, key=None, seed: int = 0):
    """JAX/Pallas equivalent of the torch drop_path() / DropPath.forward()."""
    if drop_prob == 0.0 or not training:
        return x
    keep_prob = 1.0 - float(drop_prob)

    B = x.shape[0]
    F = int(math.prod(x.shape[1:])) if x.ndim > 1 else 1

    # Per-sample keep mask / scale with standard JAX RNG (only B values).
    # floor(keep_prob + U[0,1)) exactly mirrors the PyTorch implementation.
    if key is None:
        key = jax.random.PRNGKey(seed)  # pass a fresh key per training step in real use
    u = jax.random.uniform(key, (B,), dtype=jnp.float32)
    scale = jnp.floor(keep_prob + u) * jnp.float32(1.0 / keep_prob)  # {0, 1/keep_prob}, f32

    itemsize = jnp.dtype(x.dtype).itemsize
    tile_target, vmem_limit = _device_budgets()
    total_bytes = B * F * itemsize
    # Keep >= ~4 grid steps (when the array is big enough) so v7x's two TensorCores
    # both get pipelined work; never shrink the tile below 512 KiB for this reason.
    eff_target = min(tile_target, max(512 * 1024, total_bytes // 4))
    tb, td = _choose_tiles(B, F, itemsize, eff_target)

    grid = (pl.cdiv(B, tb), pl.cdiv(F, td))
    b_pad = grid[0] * tb  # pad the scale vector so in-kernel slicing never goes OOB

    scale2d = jnp.zeros((b_pad, 1), jnp.float32).at[:B, 0].set(scale)
    x2d = x.reshape(B, F)

    def kernel(scale_ref, x_ref, o_ref):
        # scale_ref: resident (b_pad, 1) f32 per-sample scales; slice this row-group.
        r0 = pl.program_id(0) * tb
        if tb % 8 == 0:
            r0 = pl.multiple_of(r0, 8)
        s = scale_ref[pl.ds(r0, tb), :]               # (tb, 1) f32
        # Multiply in f32 (VPU up-converts), cast only the result to the output dtype.
        o_ref[...] = (x_ref[...] * s).astype(o_ref.dtype)

    out2d = pl.pallas_call(
        kernel,
        out_shape=jax.ShapeDtypeStruct((B, F), x.dtype),
        grid=grid,
        in_specs=[
            pl.BlockSpec((b_pad, 1), lambda i, j: (0, 0)),  # resident per-sample scales
            pl.BlockSpec((tb, td), lambda i, j: (i, j)),    # lane-dense data tile
        ],
        out_specs=pl.BlockSpec((tb, td), lambda i, j: (i, j)),
        compiler_params=pltpu.CompilerParams(
            dimension_semantics=("parallel", "parallel"),
            vmem_limit_bytes=vmem_limit,
        ),
    )(scale2d, x2d)
    return out2d.reshape(x.shape)


class DropPath:
    """Mirror of the PyTorch DropPath module (forward only)."""

    def __init__(self, drop_prob=None):
        self.drop_prob = 0.0 if drop_prob is None else float(drop_prob)
        self.training = True  # torch modules default to training mode

    def __call__(self, x, key=None, seed: int = 0):
        return drop_path(x, self.drop_prob, self.training, key=key, seed=seed)


def _check_droppath(x, y, keep_prob, rtol=1e-5, atol=1e-5):
    x_np, y_np = np.asarray(x, dtype=np.float32), np.asarray(y, dtype=np.float32)
    for b in range(x_np.shape[0]):
        dropped = np.allclose(y_np[b], 0.0, atol=1e-6)
        kept = np.allclose(y_np[b], x_np[b] / keep_prob, rtol=rtol, atol=atol)
        assert dropped or kept, f"sample {b}: not a valid drop-path output"


if __name__ == "__main__":
    key = jax.random.PRNGKey(0)
    module = DropPath(drop_prob=0.5)
    keep_prob = 1.0 - module.drop_prob

    # 1) ViT-token layout, small shapes: (batch, tokens, hidden).
    B, N, D = 2, 8, 32
    x = jax.random.normal(key, (B, N, D), dtype=jnp.float32)
    module.training = True
    y = jax.block_until_ready(module(x, key=jax.random.PRNGKey(1234)))
    _check_droppath(x, y, keep_prob)

    # 2) Eval mode (or drop_prob == 0) must be the identity.
    module.training = False
    y_eval = jax.block_until_ready(module(x))
    assert np.allclose(np.asarray(y_eval), np.asarray(x))

    # 3) Lane-dense tiling path (B multiple of 8, F multiple of 128).
    module.training = True
    x2 = jax.random.normal(jax.random.PRNGKey(1), (8, 4, 128), dtype=jnp.float32)
    y2 = jax.block_until_ready(module(x2, key=jax.random.PRNGKey(7)))
    _check_droppath(x2, y2, keep_prob)

    # 4) Ragged on both axes: B not a multiple of 8, F not a multiple of 128.
    x3 = jax.random.normal(jax.random.PRNGKey(2), (10, 3, 50), dtype=jnp.float32)
    y3 = jax.block_until_ready(module(x3, key=jax.random.PRNGKey(3)))
    _check_droppath(x3, y3, keep_prob)

    # 5) bf16 path (packed sublanes; scale kept in f32, product cast to bf16).
    x4 = jax.random.normal(jax.random.PRNGKey(4), (16, 4, 64), dtype=jnp.bfloat16)
    y4 = jax.block_until_ready(module(x4, key=jax.random.PRNGKey(5)))
    _check_droppath(x4, y4, keep_prob, rtol=2e-2, atol=2e-2)

    print("KERNEL_OK")
</pallas_src>

<mosaic_0001>
module attributes {stable_mosaic.version = 11 : i64} {
  func.func @kernel(%arg0: i32, %arg1: i32, %arg2: memref<2x1xf32, #tpu.memory_space<vmem>>, %arg3: memref<2x256xf32, #tpu.memory_space<vmem>>, %arg4: memref<2x256xf32, #tpu.memory_space<vmem>>) attributes {dimension_semantics = [#tpu.dimension_semantics<parallel>, #tpu.dimension_semantics<parallel>], iteration_bounds = array<i64: 1, 1>, scalar_prefetch = 0 : i64, scratch_operands = 0 : i64, tpu.core_type = #tpu.core_type<tc>, window_params = [{pipeline_mode = #tpu.pipeline_mode<synchronous>, transform_indices = @transform_0, window_bounds = array<i64: 2, 1>}, {transform_indices = @transform_1, window_bounds = array<i64: 2, 256>}, {transform_indices = @transform_2, window_bounds = array<i64: 2, 256>}]} {
    %c2_i32 = arith.constant 2 : i32
    %0 = arith.muli %arg0, %c2_i32 : i32
    %1 = arith.index_cast %0 : i32 to index
    %c0 = arith.constant 0 : index
    %2 = vector.load %arg2[%1, %c0] : memref<2x1xf32, #tpu.memory_space<vmem>>, vector<2x1xf32>
    %c0_0 = arith.constant 0 : index
    %c0_1 = arith.constant 0 : index
    %3 = vector.load %arg3[%c0_0, %c0_1] : memref<2x256xf32, #tpu.memory_space<vmem>>, vector<2x256xf32>
    %4 = vector.broadcast %2 : vector<2x1xf32> to vector<2x256xf32>
    %5 = arith.mulf %3, %4 : vector<2x256xf32>
    %c0_2 = arith.constant 0 : index
    %c0_3 = arith.constant 0 : index
    %6 = vector.load %arg4[%c0_2, %c0_3] : memref<2x256xf32, #tpu.memory_space<vmem>>, vector<2x256xf32>
    tpu.vector_store %arg4[%c0_2, %c0_3], %5 {strides = array<i32>} : memref<2x256xf32, #tpu.memory_space<vmem>>, vector<2x256xf32>,
    return
  }
  func.func @transform_0(%arg0: i32, %arg1: i32) -> (i32, i32) {
    %c0_i32 = arith.constant 0 : i32
    %c0_i32_0 = arith.constant 0 : i32
    %c0_i32_1 = arith.constant 0 : i32
    return %c0_i32, %c0_i32_0 : i32, i32
  }
  func.func @transform_1(%arg0: i32, %arg1: i32) -> (i32, i32) {
    %c0_i32 = arith.constant 0 : i32
    return %arg0, %arg1 : i32, i32
  }
  func.func @transform_2(%arg0: i32, %arg1: i32) -> (i32, i32) {
    %c0_i32 = arith.constant 0 : i32
    return %arg0, %arg1 : i32, i32
  }
}

</mosaic_0001>

<bundles_post_ra>
// kernel: tpu_custom_call.1
= control target key start
LH: loop header
LB: loop body
LE: loop exit
PB: predicated region body
PF: predicated region fallthrough
CT: control target
= control target key end

     0   :  { %v72_v1 = vmov 0   ;;  %s108_s0 = inlined_call_operand.vmem [shape: f32[2,1], index: 0, kind: input, shape index: {}]   ;;  %s109_s1 = inlined_call_operand.vmem [shape: f32[2,256], index: 1, kind: input, shape index: {}]   ;;  %s110_s2 = inlined_call_operand.hbm [shape: f32[2,256], index: 2, kind: output, shape index: {}]  }
   0x1   :  { %v14_v0 = vld [vmem:[%s108_s0] sm:$0x3]  ;;  %47 = vset.pattern.permute.xlu0 %v72_v1 }
   0x2   :  { %7 = vsyncpa [#allocation3], 0  ;;  %18 = vperm.xlu0 %47, %v14_v0   ;;  %v73_v2 = vmov 269488144   ;;  %v23_v4 = vlaneseq  ;;  %v15_v9 = vld [vmem:[%s109_s1] sm:$0xf] }
   0x3   :  { %v21_v3 = vunpack.c.l.s4 %v73_v2  ;;  %s74_s13 = smov [#allocation2]  }
   0x4   :  { %v24_v6 = vshrl.u32 %v23_v4, 7  ;;  %s36_s14 = sshll.u32 %s74_s13, 4  ;;  %s37_s14 = int_to_ptr.vmem [resolvable:$true] %s36_s14 }
   0x5   :  { %v22_v5 = vunpack.c.0.s8 %v21_v3  ;;  %s48_s0 = scalar_lea.vmem %s37_s14, 64  ;;  %p53_p1 = scmp.lt.s32.totalorder %s37_s14, %s37_s14 }
   0x6   :  { %p49_p0 = scmp.ne.s32.totalorder %s37_s14, %s48_s0  ;;  %p54_p2 = scmp.lt.s32.totalorder %s48_s0, %s48_s0 }
   0x7   :  { %v25_v7 = vsub.s32 %v22_v5, %v24_v6 }
   0x8   :  { %p55_p3 = por %p54_p2, %p53_p1 }
   0xa   :  { %p56_p4 = pnand %p55_p3, %p49_p0 }
  0x81   :  { %v19_v8 = vpop.permute.xlu0 %18 }
  0x82   :  { %v26_v10 = vrot.slane %v19_v8, %v25_v7 }
  0x84   :  { %v28_v11 = vmul.f32 %v26_v10, %v15_v9 }
  0x86   :  { %29 = vst [vmem:[#allocation2] sm:$0xf] %v28_v11 }
  0x87   :  { %59 = shalt.err (!%p56_p4)
}
  0x88   :  { %s60_s17 = scalar_lea.hbm %s110_s2, 64 }
  0x89   :  { %p61_p5 = scmp.ne.s32.totalorder %s110_s2, %s60_s17  ;;  %p64_p6 = scmp.lt.u32.totalorder %s60_s17, %s110_s2 }
  0x8b   :  { %p66_p7 = pnand %p64_p6, %p61_p5 }
  0x8d   :  { %69 = shalt.err (!%p66_p7)
}
  0x8e   :  { %39 = dma.vmem_to_hbm [thread:$0]  %s37_s14, 64, %s110_s2, [#allocation3]  }
  0x8f   :  { %70 = dma.done.wait [#allocation3], 64  }
  0x90   :  { %71 = vsyncadd [#allocation3], 4294967232 }
  0x91   :  { %43 = vsyncpa [#allocation3], 1 }

</bundles_post_ra>
